<compile_context>
chip_gen: v5e
topology: v5e:2x2
jax: 0.10.0
libtpu: 0.0.40
codegen_flags: <defaults>
</compile_context>

<pallas_src>
import jax
import jax.numpy as jnp
from jax import lax
from jax.experimental import pallas as pl
from jax.experimental.pallas import tpu as pltpu


def _round_up(x, m):
    return (x + m - 1) // m * m


def _cdiv(a, b):
    return -(-a // b)


def _tpu_vmem_capacity_bytes():
    """Physical per-core VMEM bytes; conservative 64 MiB fallback."""
    try:
        cap = int(pltpu.get_tpu_info().vmem_capacity_bytes)
        if cap > 0:
            return cap
    except Exception:
        pass
    return 64 << 20


def _mxu_width():
    """MXU side length; conservative 128 (v5e) fallback."""
    try:
        info = pltpu.get_tpu_info()
        for attr in ("mxu_size", "mxu_column_count", "matmul_unit_width"):
            v = getattr(info, attr, None)
            if isinstance(v, int) and v > 0:
                return v
    except Exception:
        pass
    return 128


def _make_style_kernel(c, hw, tk, fused):
    ragged = (hw % tk) != 0
    dims = (((1,), (1,)), ((), ()))  # contract both operands on their LAST axis

    def kernel(cond_ref, targ_ref, out_ref, *scratch):
        k = pl.program_id(1)
        last = pl.num_programs(1) - 1

        fc = cond_ref[0]  # (C, tk)
        ft = targ_ref[0]  # (C, tk)

        if ragged:
            # The final HW chunk extends past the array; its OOB columns hold
            # unspecified data.  Zeroing them leaves the Gram matrix unchanged.
            col = lax.broadcasted_iota(jnp.int32, (c, tk), 1)
            valid = (k * tk + col) < hw
            fc = jnp.where(valid, fc, jnp.zeros_like(fc))
            ft = jnp.where(valid, ft, jnp.zeros_like(ft))

        if fused:
            # Single MXU pass over the stacked (2C, tk) operand; the (2C, 2C)
            # result's diagonal CxC blocks are G1 and G2.
            (g_ref,) = scratch

            @pl.when(k == 0)
            def _():
                g_ref[...] = jnp.zeros_like(g_ref)

            s = jnp.concatenate([fc, ft], axis=0)  # VMEM-local, no HBM copy
            g_ref[...] += lax.dot_general(
                s, s, dimension_numbers=dims,
                preferred_element_type=jnp.float32)

            @pl.when(k == last)
            def _():
                g = g_ref[...]
                diff = g[:c, :c] - g[c:, c:]
                out_ref[...] = jnp.full_like(out_ref, jnp.sum(jnp.abs(diff)))
        else:
            g1_ref, g2_ref = scratch

            @pl.when(k == 0)
            def _():
                g1_ref[...] = jnp.zeros_like(g1_ref)
                g2_ref[...] = jnp.zeros_like(g2_ref)

            g1_ref[...] += lax.dot_general(
                fc, fc, dimension_numbers=dims,
                preferred_element_type=jnp.float32)
            g2_ref[...] += lax.dot_general(
                ft, ft, dimension_numbers=dims,
                preferred_element_type=jnp.float32)

            @pl.when(k == last)
            def _():
                out_ref[...] = jnp.full_like(
                    out_ref, jnp.sum(jnp.abs(g1_ref[...] - g2_ref[...])))

    return kernel


def style_loss(condition, target, *, hw_tile=None, fuse=None):
    """L1 loss between Gram matrices of `condition` and `target` (both NCHW)."""
    assert condition.shape == target.shape
    n, c, h, w = condition.shape
    hw = h * w

    # dtype policy: any 16-bit float computes in bf16 (half HBM bytes,
    # full-rate MXU, f32 accumulation); everything else is promoted to f32.
    if condition.dtype in (jnp.bfloat16, jnp.float16):
        compute_dtype = jnp.bfloat16
    else:
        compute_dtype = jnp.float32
    itemsize = jnp.dtype(compute_dtype).itemsize
    sub = 8 if itemsize == 4 else 16  # sublane rows per tile for this dtype

    cond_f = condition.reshape(n, c, hw).astype(compute_dtype)
    targ_f = target.reshape(n, c, hw).astype(compute_dtype)

    # ---- generation-aware VMEM budget & HW-tile selection -------------------
    vmem_cap = _tpu_vmem_capacity_bytes()
    # Pipelined input working-set budget: ~24 MiB on 64 MiB parts (v7x-class),
    # ~48 MiB on 128 MiB parts (v5e / v6e).
    input_budget = (24 << 20) if vmem_cap <= (64 << 20) else (48 << 20)

    c_sub = _round_up(c, sub)
    bytes_per_col = 2 * 2 * c_sub * itemsize  # 2 inputs x 2 pipeline buffers

    if hw_tile is not None:
        if hw_tile >= hw:
            tk = hw
        else:
            tk = (hw_tile // 128) * 128  # block last dim must be 128-aligned
            assert tk >= 128, "hw_tile must be >= 128 (or >= H*W)"
    else:
        max_cols = max(128, input_budget // bytes_per_col)
        if _round_up(hw, 128) <= max_cols:
            tk = hw                       # single full-HW slab (no pipelining)
        else:
            tk = (max_cols // 128) * 128  # lane-aligned chunk filling the budget
    n_k = _cdiv(hw, tk)

    # ---- fused (2C, tk) operand decision (MXU-utilization, small C) ---------
    if fuse is None:
        fuse = (c % sub == 0) and (2 * c <= _mxu_width())

    # ---- pipelining depth ----------------------------------------------------
    tk_lane = _round_up(tk, 128)
    block_bytes = c_sub * tk_lane * itemsize
    n_buf = 3 if (n_k >= 3 and block_bytes <= (2 << 20)) else 2

    spec_kwargs = {}
    if n_buf != 2:
        spec_kwargs["pipeline_mode"] = pl.Buffered(n_buf)
    in_spec = pl.BlockSpec((1, c, tk), lambda b, k: (b, 0, k), **spec_kwargs)

    # ---- scratch, cost estimate & VMEM limit ---------------------------------
    if fuse:
        scratch_shapes = [pltpu.VMEM((2 * c, 2 * c), jnp.float32)]
        gram_bytes = _round_up(2 * c, 8) * _round_up(2 * c, 128) * 4
        flops = 2 * n * (2 * c) * (2 * c) * hw
    else:
        scratch_shapes = [pltpu.VMEM((c, c), jnp.float32),
                          pltpu.VMEM((c, c), jnp.float32)]
        gram_bytes = 2 * _round_up(c, 8) * _round_up(c, 128) * 4
        flops = 4 * n * c * c * hw

    vmem_needed = (2 * n_buf * block_bytes   # pipelined input buffers
                   + gram_bytes              # resident Gram accumulator(s)
                   + 2 * 8 * 128 * 4         # output tile (double-buffered)
                   + (8 << 20))              # compiler headroom
    vmem_limit = int(min(max(vmem_needed, 32 << 20), int(vmem_cap * 0.9)))

    cost = pl.CostEstimate(
        flops=flops,
        transcendentals=0,
        bytes_accessed=2 * n * c * hw * itemsize + n * 8 * 128 * 4,
    )

    kernel = _make_style_kernel(c, hw, tk, fuse)

    partial = pl.pallas_call(
        kernel,
        out_shape=jax.ShapeDtypeStruct((n, 8, 128), jnp.float32),
        grid_spec=pltpu.PrefetchScalarGridSpec(
            num_scalar_prefetch=0,
            # The resident Gram accumulators require the k (reduction) axis to
            # stay innermost and "arbitrary"; do not reorder these axes.
            grid=(n, n_k),
            in_specs=[in_spec, in_spec],
            out_specs=pl.BlockSpec((1, 8, 128), lambda b, k: (b, 0, 0)),
            scratch_shapes=scratch_shapes,
        ),
        compiler_params=pltpu.CompilerParams(
            dimension_semantics=("parallel", "arbitrary"),
            vmem_limit_bytes=vmem_limit,
        ),
        cost_estimate=cost,
    )(cond_f, targ_f)

    # nn.L1Loss(reduction='mean') over all N*C*C Gram entries.
    return jnp.sum(partial[:, 0, 0]) / jnp.float32(n * c * c)


def _reference_style_loss(condition, target):
    n, c, h, w = condition.shape
    fc = condition.reshape(n, c, h * w).astype(jnp.float32)
    ft = target.reshape(n, c, h * w).astype(jnp.float32)
    g1 = jnp.matmul(fc, jnp.swapaxes(fc, 1, 2))
    g2 = jnp.matmul(ft, jnp.swapaxes(ft, 1, 2))
    return jnp.mean(jnp.abs(g1 - g2))


if __name__ == "__main__":
    key = jax.random.PRNGKey(0)

    def _check(n, c, h, w, dtype=jnp.float32, rtol=1e-5, atol=1e-5, **kw):
        k1, k2 = jax.random.split(jax.random.fold_in(key, n * 1000 + c * 100 + h))
        cond = jax.random.normal(k1, (n, c, h, w), dtype=jnp.float32).astype(dtype)
        targ = jax.random.normal(k2, (n, c, h, w), dtype=jnp.float32).astype(dtype)
        ref = _reference_style_loss(cond.astype(jnp.float32),
                                    targ.astype(jnp.float32))
        out = style_loss(cond, targ, **kw)
        jax.block_until_ready(out)
        assert jnp.allclose(out, ref, rtol=rtol, atol=atol), (kw, dtype, out, ref)

    # 1) Unfused path (C not sublane-aligned), single full-HW slab.
    _check(2, 4, 16, 16)
    # 2) Fused (2C, tk) single-MXU-pass path, single full-HW slab.
    _check(2, 16, 16, 16)
    # 3) Tiled HW with a ragged last chunk: in-kernel iota mask, no jnp.pad.
    _check(2, 4, 12, 12, hw_tile=128)
    # 4) Fused + tiled (n_k = 4) + triple-buffered input pipeline.
    _check(1, 16, 32, 32, hw_tile=256)
    # 5) bf16 inputs: bf16 MXU with f32 accumulation (looser tolerance).
    _check(2, 16, 16, 16, dtype=jnp.bfloat16, rtol=5e-2, atol=5e-2)

    print("KERNEL_OK")
</pallas_src>

<mosaic_0001>
module attributes {stable_mosaic.version = 11 : i64} {
  func.func @kernel(%arg0: i32, %arg1: i32, %arg2: memref<1x4x256xf32, #tpu.memory_space<vmem>>, %arg3: memref<1x4x256xf32, #tpu.memory_space<vmem>>, %arg4: memref<1x8x128xf32, #tpu.memory_space<vmem>>, %arg5: memref<4x4xf32, #tpu.memory_space<vmem>>, %arg6: memref<4x4xf32, #tpu.memory_space<vmem>>) attributes {dimension_semantics = [#tpu.dimension_semantics<parallel>, #tpu.dimension_semantics<arbitrary>], iteration_bounds = array<i64: 2, 1>, scalar_prefetch = 0 : i64, scratch_operands = 2 : i64, tpu.core_type = #tpu.core_type<tc>, window_params = [{transform_indices = @transform_0, window_bounds = array<i64: 1, 4, 256>}, {transform_indices = @transform_1, window_bounds = array<i64: 1, 4, 256>}, {transform_indices = @transform_2, window_bounds = array<i64: 1, 8, 128>}]} {
    %c0 = arith.constant 0 : index
    %c0_0 = arith.constant 0 : index
    %c0_1 = arith.constant 0 : index
    %0 = vector.load %arg2[%c0, %c0_0, %c0_1] : memref<1x4x256xf32, #tpu.memory_space<vmem>>, vector<1x4x256xf32>
    %1 = vector.shape_cast %0 : vector<1x4x256xf32> to vector<4x256xf32>
    %c0_2 = arith.constant 0 : index
    %c0_3 = arith.constant 0 : index
    %c0_4 = arith.constant 0 : index
    %2 = vector.load %arg3[%c0_2, %c0_3, %c0_4] : memref<1x4x256xf32, #tpu.memory_space<vmem>>, vector<1x4x256xf32>
    %3 = vector.shape_cast %2 : vector<1x4x256xf32> to vector<4x256xf32>
    %c0_i32 = arith.constant 0 : i32
    %4 = arith.cmpi eq, %arg1, %c0_i32 : i32
    %5 = arith.extui %4 : i1 to i32
    %c0_i32_5 = arith.constant 0 : i32
    %6 = arith.cmpi ne, %5, %c0_i32_5 : i32
    scf.if %6 {
      %cst_17 = arith.constant 0.000000e+00 : f32
      %18 = vector.broadcast %cst_17 : f32 to vector<4x4xf32>
      %c0_18 = arith.constant 0 : index
      %c0_19 = arith.constant 0 : index
      %19 = vector.load %arg5[%c0_18, %c0_19] : memref<4x4xf32, #tpu.memory_space<vmem>>, vector<4x4xf32>
      tpu.vector_store %arg5[%c0_18, %c0_19], %18 {strides = array<i32>} : memref<4x4xf32, #tpu.memory_space<vmem>>, vector<4x4xf32>,
      %cst_20 = arith.constant 0.000000e+00 : f32
      %20 = vector.broadcast %cst_20 : f32 to vector<4x4xf32>
      %c0_21 = arith.constant 0 : index
      %c0_22 = arith.constant 0 : index
      %21 = vector.load %arg6[%c0_21, %c0_22] : memref<4x4xf32, #tpu.memory_space<vmem>>, vector<4x4xf32>
      tpu.vector_store %arg6[%c0_21, %c0_22], %20 {strides = array<i32>} : memref<4x4xf32, #tpu.memory_space<vmem>>, vector<4x4xf32>,
    } else {
    }
    %c0_6 = arith.constant 0 : index
    %c0_7 = arith.constant 0 : index
    %7 = vector.load %arg5[%c0_6, %c0_7] : memref<4x4xf32, #tpu.memory_space<vmem>>, vector<4x4xf32>
    %cst = arith.constant dense<0.000000e+00> : vector<4x4xf32>
    %8 = tpu.matmul %1, %1, %cst {dimension_numbers = #tpu.dot_dimension_numbers<[1], [1], [0], [0], [0, 0, 1, 0], [], []>} : vector<4x256xf32>, vector<4x256xf32>, vector<4x4xf32> -> vector<4x4xf32>
    %9 = arith.addf %7, %8 : vector<4x4xf32>
    %c0_8 = arith.constant 0 : index
    %c0_9 = arith.constant 0 : index
    %10 = vector.load %arg5[%c0_8, %c0_9] : memref<4x4xf32, #tpu.memory_space<vmem>>, vector<4x4xf32>
    tpu.vector_store %arg5[%c0_8, %c0_9], %9 {strides = array<i32>} : memref<4x4xf32, #tpu.memory_space<vmem>>, vector<4x4xf32>,
    %c0_10 = arith.constant 0 : index
    %c0_11 = arith.constant 0 : index
    %11 = vector.load %arg6[%c0_10, %c0_11] : memref<4x4xf32, #tpu.memory_space<vmem>>, vector<4x4xf32>
    %cst_12 = arith.constant dense<0.000000e+00> : vector<4x4xf32>
    %12 = tpu.matmul %3, %3, %cst_12 {dimension_numbers = #tpu.dot_dimension_numbers<[1], [1], [0], [0], [0, 0, 1, 0], [], []>} : vector<4x256xf32>, vector<4x256xf32>, vector<4x4xf32> -> vector<4x4xf32>
    %13 = arith.addf %11, %12 : vector<4x4xf32>
    %c0_13 = arith.constant 0 : index
    %c0_14 = arith.constant 0 : index
    %14 = vector.load %arg6[%c0_13, %c0_14] : memref<4x4xf32, #tpu.memory_space<vmem>>, vector<4x4xf32>
    tpu.vector_store %arg6[%c0_13, %c0_14], %13 {strides = array<i32>} : memref<4x4xf32, #tpu.memory_space<vmem>>, vector<4x4xf32>,
    %c0_i32_15 = arith.constant 0 : i32
    %15 = arith.cmpi eq, %arg1, %c0_i32_15 : i32
    %16 = arith.extui %15 : i1 to i32
    %c0_i32_16 = arith.constant 0 : i32
    %17 = arith.cmpi ne, %16, %c0_i32_16 : i32
    scf.if %17 {
      %c0_17 = arith.constant 0 : index
      %c0_18 = arith.constant 0 : index
      %18 = vector.load %arg5[%c0_17, %c0_18] : memref<4x4xf32, #tpu.memory_space<vmem>>, vector<4x4xf32>
      %c0_19 = arith.constant 0 : index
      %c0_20 = arith.constant 0 : index
      %19 = vector.load %arg6[%c0_19, %c0_20] : memref<4x4xf32, #tpu.memory_space<vmem>>, vector<4x4xf32>
      %20 = arith.subf %18, %19 : vector<4x4xf32>
      %21 = math.absf %20 : vector<4x4xf32>
      %22 = vector.shape_cast %21 : vector<4x4xf32> to vector<1x4x4xf32>
      %cst_21 = arith.constant dense<0.000000e+00> : vector<1xf32>
      %23 = vector.multi_reduction <add>, %22, %cst_21 [1, 2] : vector<1x4x4xf32> to vector<1xf32>
      %24 = vector.shape_cast %23 : vector<1xf32> to vector<1x1x1xf32>
      %25 = vector.extract %24[0, 0, 0] : f32 from vector<1x1x1xf32>
      %26 = vector.broadcast %25 : f32 to vector<1x8x128xf32>
      %c0_22 = arith.constant 0 : index
      %c0_23 = arith.constant 0 : index
      %c0_24 = arith.constant 0 : index
      %27 = vector.load %arg4[%c0_22, %c0_23, %c0_24] : memref<1x8x128xf32, #tpu.memory_space<vmem>>, vector<1x8x128xf32>
      tpu.vector_store %arg4[%c0_22, %c0_23, %c0_24], %26 {strides = array<i32>} : memref<1x8x128xf32, #tpu.memory_space<vmem>>, vector<1x8x128xf32>,
    } else {
    }
    return
  }
  func.func @transform_0(%arg0: i32, %arg1: i32) -> (i32, i32, i32) {
    %c0_i32 = arith.constant 0 : i32
    %c0_i32_0 = arith.constant 0 : i32
    return %arg0, %c0_i32, %arg1 : i32, i32, i32
  }
  func.func @transform_1(%arg0: i32, %arg1: i32) -> (i32, i32, i32) {
    %c0_i32 = arith.constant 0 : i32
    %c0_i32_0 = arith.constant 0 : i32
    return %arg0, %c0_i32, %arg1 : i32, i32, i32
  }
  func.func @transform_2(%arg0: i32, %arg1: i32) -> (i32, i32, i32) {
    %c0_i32 = arith.constant 0 : i32
    %c0_i32_0 = arith.constant 0 : i32
    %c0_i32_1 = arith.constant 0 : i32
    return %arg0, %c0_i32, %c0_i32_0 : i32, i32, i32
  }
}

</mosaic_0001>

<bundles_post_ra>
// kernel: tpu_custom_call.1
= control target key start
LH: loop header
LB: loop body
LE: loop exit
PB: predicated region body
PF: predicated region fallthrough
CT: control target
= control target key end

     0   :  { %7 = vsyncpa [#allocation5], 0  ;;  %s876_s0 = inlined_call_operand.hbm [shape: f32[2,4,256], index: 0, kind: input, shape index: {}]   ;;  %s877_s1 = inlined_call_operand.hbm [shape: f32[2,4,256], index: 1, kind: input, shape index: {}]   ;;  %s878_s2 = inlined_call_operand.hbm [shape: f32[2,8,128], index: 2, kind: output, shape index: {}]  }
   0x1   :  { %9 = vsyncpa [#allocation5 + $0x1], 0 }
   0x2   :  { %10 = vsyncpa [#allocation8], 0 }
   0x3   :  { %12 = vsyncpa [#allocation8 + $0x1], 0 }
   0x4   :  { %13 = vsyncpa [#allocation6], 0 }
   0x5   :  { %15 = vsyncpa [#allocation6 + $0x1], 0  ;;  %s738_s9 = smov 0   ;;  %s740_s10 = smov 0  }
   0x6   :  { %s742_s11 = smov 0   ;;  %s744_s12 = smov 0  }
   0x7   :  { %s746_s13 = smov 0   ;;  %s748_s14 = smov 0  }
   0x8 LB: > { %s484_s15 = sadd.s32 4294967295, %s720_s14   ;;  %s485_s16 = sadd.s32 4294967294, %s720_s14   ;;  %s720_s14 = sphi %s748_s14, %s21_s14   ;;  %s716_s13 = sphi %s746_s13, %s887_s13   ;;  %s712_s12 = sphi %s744_s12, %s886_s12   ;;  %s708_s11 = sphi %s742_s11, %s885_s11   ;;  %s704_s10 = sphi %s740_s10, %s884_s10   ;;  %s700_s9 = sphi %s738_s9, %s883_s9  }
   0x9   : > { %s33_s17 = sadd.s32 1, %s716_s13  ;;  %s42_s18 = sadd.s32 1, %s708_s11 }
   0xa   : > { %p35_p0 = scmp.ge.s32.totalorder %s33_s17, 2  ;;  %p49_p1 = scmp.ne.s32.totalorder %s708_s11, %s704_s10 }
   0xb   : > { %p50_p2 = scmp.eq.s32.totalorder %s720_s14, 0  ;;  %p55_p3 = scmp.ne.s32.totalorder %s704_s10, %s700_s9 }
   0xc   : > { %s889_s17 = smov (%p35_p0, %s33_s17), 0  ;;  %p56_p5 = scmp.eq.s32.totalorder %s484_s15, 0 }
   0xd   : > { %p779_p4 = por %p50_p2, %p49_p1  ;;  %s37_s20 = ssub.s32 %s716_s13, %s889_s17 }
   0xe   : > { %p107_p6 = scmp.eq.s32.totalorder %s484_s15, 1  ;;  %p40_p7 = scmp.eq.s32.totalorder %s37_s20, 0 }
   0xf   : > { %p785_p8 = por %p56_p5, %p55_p3  ;;  %p113_p10 = scmp.eq.s32.totalorder %s485_s16, 1 }
  0x10   : > { %p789_p9 = por %p107_p6, %p49_p1  ;;  %p487_p12 = scmp.ge.s32.totalorder %s720_s14, 2 }
  0x11   : > { %s794_s23 = scalar_select %p40_p7, %s708_s11, %s42_s18  }
  0x12   : > { %p796_p11 = por %p113_p10, %p55_p3  ;;  %p523_p13 = scmp.lt.s32.totalorder %s720_s14, 2 }
  0x13   : > { %s133_s25 = sand.u32 1, %s708_s11   ;;  %s502_s27 = sshll.u32 %s716_s13, 3 }
  0x14   : > { %s488_s26 = sshll.u32 %s133_s25, 3  ;;  %s144_s30 = scalar_lea.hbm %s876_s0, %s502_s27 }
  0x15   : > { %s137_s3 = scalar_lea.vmem [#allocation4], %s488_s26  ;;  %s146_s5 = sshll.u32 %s144_s30, 4  ;;  %s147_s5 = int_to_ptr.hbm [resolvable:$true] %s146_s5 }
  0x16   : > { %s148_s4 = sshll.u32 %s137_s3, 4  ;;  %p513_p0 = pnand %p523_p13, %p779_p4  ;;  %s149_s4 = int_to_ptr.vmem [resolvable:$true] %s148_s4 }
  0x17   : > { %p494_p1 = scmp.ge.s32.totalorder %s720_s14, 1  ;;  %p175_p2 = scmp.lt.s32.totalorder %s720_s14, 3 }
  0x18   : > { %s134_s6 = scalar_lea.sflag [#allocation5], %s133_s25  ;;  %s166_s15 = scalar_lea.hbm %s877_s1, %s502_s27 }
  0x19   : > { %515 = dma.hbm_to_vmem [thread:$0]  (!%p513_p0), %s147_s5, 128, %s149_s4, %s134_s6  }
  0x1a   : > { %p176_p3 = pnand %p494_p1, %p175_p2  ;;  %s159_s16 = scalar_lea.vmem [#allocation7], %s488_s26 }
  0x1b   : > { %s170_s18 = sshll.u32 %s159_s16, 4  ;;  %s168_s20 = sshll.u32 %s166_s15, 4  ;;  %s171_s18 = int_to_ptr.vmem [resolvable:$true] %s170_s18  ;;  %s169_s20 = int_to_ptr.hbm [resolvable:$true] %s168_s20 }
  0x1c   : > { %s156_s28 = scalar_lea.sflag [#allocation8], %s133_s25  ;;  %179 = sbr.rel (%p176_p3) target bundleno = 403 (0x193), region = 28 }
  0x1d   : > { %518 = dma.hbm_to_vmem [thread:$0]  (!%p513_p0), %s169_s20, 128, %s171_s18, %s156_s28  }
  0x1e   : > { %s815_s19 = sand.u32 (!%p176_p3), 1, %s704_s10  }
  0x1f   : > { %s818_s29 = sshll.u32 (!%p176_p3), %s815_s19, 3  ;;  %s182_s30 = scalar_lea.sflag (!%p176_p3), [#allocation5], %s815_s19 }
  0x20   : > { %s185_s3 = scalar_lea.vmem (!%p176_p3), [#allocation4], %s818_s29 }
  0x21   : > { %687 = dma.done.wait (%p785_p8), %s182_s30, 128  }
  0x22   : > { %689 = vsyncadd (%p785_p8), %s182_s30, 4294967168  ;;  %s192_s25 = scalar_lea.sflag [#allocation8], %s815_s19  ;;  %s195_s26 = scalar_lea.vmem [#allocation7], %s818_s29 }
  0x23   : > { %691 = dma.done.wait (%p785_p8), %s192_s25, 128  }
  0x24   : > { %693 = vsyncadd (%p785_p8), %s192_s25, 4294967168  ;;  %v224_v0 = vld [vmem:[%s185_s3] sm:$0xff]  ;;  %v225_v3 = vld [vmem:[%s195_s26] sm:$0xff]  ;;  %vm230_vm0 = vcmask 27648   ;;  %v722_v10 = vmov 0.0   ;;  %s499_s21 = sshll.u32 %s712_s12, 3 }
  0x25   : > { %235 = vst [vmem:[#allocation1] ss:$2 sm:$0xff] %v224_v0  ;;  %s372_s5 = scalar_lea.hbm %s878_s2, %s499_s21  ;;  %s221_s6 = scalar_lea.vmem [#allocation9], %s818_s29 }
  0x26   : > { %231 = vst.msk [vmem:[#allocation2] sm:$0xf] %vm230_vm0, %v722_v10  ;;  %s374_s7 = sshll.u32 %s221_s6, 4  ;;  %s376_s8 = sshll.u32 %s372_s5, 4  ;;  %s375_s7 = int_to_ptr.vmem [resolvable:$true] %s374_s7  ;;  %s377_s8 = int_to_ptr.hbm [resolvable:$true] %s376_s8 }
  0x27   : > { %232 = vst.msk [vmem:[#allocation3] sm:$0xf] %vm230_vm0, %v722_v10  ;;  %s362_s16 = scalar_lea.sflag [#allocation6], %s815_s19  ;;  %s648_s18 = sshra.s32 %s377_s8, 4  ;;  %s649_s18 = int_to_ptr.hbm [resolvable:$true] %s648_s18 }
  0x28   : > { %s650_s20 = scalar_lea.hbm %s649_s18, 8  ;;  %s654_s30 = scalar_lea.hbm %s878_s2, 16 }
  0x29   : > { %p651_p4 = scmp.ne.s32.totalorder %s649_s18, %s650_s20  ;;  %p655_p7 = scmp.lt.s32.totalorder %s649_s18, %s878_s2 }
  0x2a   : > { %p656_p8 = scmp.lt.s32.totalorder %s654_s30, %s650_s20 }
  0x2b   : > { %p652_p5 = pnand %p651_p4, %p789_p9 }
  0x2c   : > { %v236_v1 = vld.sshfl [vmem:[#allocation1] sm:$0xff pattern:$0x75316420]  ;;  %v237_v2 = vld.sshfl [vmem:[#allocation1 + $0x8] sm:$0xff pattern:$0x75316420]  ;;  %p657_p10 = por %p656_p8, %p655_p7 }
  0x2d   : > { %240 = vst [vmem:[#allocation1] ss:$2 sm:$0xff] %v224_v0  ;;  %v233_v12 = vld [vmem:[#allocation2] sm:$0xf]  ;;  %p653_p6 = pneg %p652_p5 }
  0x2e   : > { %v288_v17 = vld [vmem:[#allocation3] sm:$0xf] }
  0x2f   : > { %p658_p13 = pnand %p657_p10, %p653_p6 }
  0x34   : > { %v241_v4 = vld.sshfl [vmem:[#allocation1] sm:$0xff pattern:$0x75316420]  ;;  %v242_v5 = vld.sshfl [vmem:[#allocation1 + $0x8] sm:$0xff pattern:$0x75316420] }
  0x35   : > { %290 = vst [vmem:[#allocation1] ss:$2 sm:$0xff] %v225_v3  ;;  %260 = vmatpush.xpose.msra.mxu0 %v241_v4  ;;  %280 = vmatpush.xpose.msra.mxu1 %v242_v5 }
  0x38   : > { %261 = vmatmul.f32.vlgmr.msra.gmra.mxu0 %v236_v1  ;;  %281 = vmatmul.f32.vlgmr.msra.gmra.mxu1 %v237_v2 }
  0x3c   : > { %v291_v6 = vld.sshfl [vmem:[#allocation1] sm:$0xff pattern:$0x75316420]  ;;  %v292_v7 = vld.sshfl [vmem:[#allocation1 + $0x8] sm:$0xff pattern:$0x75316420] }
  0x3d   : > { %295 = vst [vmem:[#allocation1] ss:$2 sm:$0xff] %v225_v3 }
  0x44   : > { %v296_v8 = vld.sshfl [vmem:[#allocation1] sm:$0xff pattern:$0x75316420]  ;;  %v297_v9 = vld.sshfl [vmem:[#allocation1 + $0x8] sm:$0xff pattern:$0x75316420] }
  0x45   : > { %315 = vmatpush.xpose.msra.mxu2 %v296_v8  ;;  %335 = vmatpush.xpose.msra.mxu3 %v297_v9 }
  0x48   : > { %316 = vmatmul.f32.vlgmr.msra.gmra.mxu2 %v291_v6  ;;  %336 = vmatmul.f32.vlgmr.msra.gmra.mxu3 %v292_v7 }
  0xb5   : > { %v262_v11 = vpop.f32.mrf.mxu0  ;;  %v282_v13 = vpop.f32.mrf.mxu1 }
  0xb6   : > { %v283_v14 = vadd.f32 %v282_v13, %v262_v11 }
  0xb8   : > { %v285_v15 = vadd.f32 %v283_v14, %v233_v12 }
  0xba   : > { %287 = vst.msk [vmem:[#allocation2] sm:$0xf] %vm230_vm0, %v285_v15 }
  0xc1   : > { %v345_v21 = vld [vmem:[#allocation2] sm:$0xf] }
  0xcb   : > { %v317_v16 = vpop.f32.mrf.mxu2  ;;  %v337_v18 = vpop.f32.mrf.mxu3 }
  0xcc   : > { %v338_v19 = vadd.f32 %v337_v18, %v317_v16 }
  0xce   : > { %v340_v20 = vadd.f32 %v338_v19, %v288_v17 }
  0xd0   : > { %341 = vst.msk [vmem:[#allocation3] sm:$0xf] %vm230_vm0, %v340_v20 }
  0xd7   : > { %v346_v22 = vld [vmem:[#allocation3] sm:$0xf] }
  0xd8   : > { %v347_v23 = vsub.f32 %v345_v21, %v346_v22 }
  0xda   : > { %v348_v24 = vand.u32 2147483647, %v347_v23 }
  0xdc   : > { %v349_v25 = vsel %vm230_vm0, %v348_v24, 0.0 }
  0xdd   : > { %350 = vadd.xlane.f32.xlu0 %v349_v25 }
 0x150   : > { %v351_v26 = vpop.xlane.xlu0 %350 }
 0x151   : > { %v352_v27 = vrot.slane %v351_v26, 4 }
 0x153   : > { %v353_v28 = vadd.f32 %v352_v27, %v351_v26 }
 0x155   : > { %v354_v29 = vrot.slane %v353_v28, 2 }
 0x157   : > { %v355_v30 = vadd.f32 %v354_v29, %v353_v28 }
 0x159   : > { %v356_v31 = vrot.slane %v355_v30, 1 }
 0x15b   : > { %v357_v32 = vadd.f32 %v356_v31, %v355_v30 }
 0x15d   : > { %504 = vpush %v357_v32 }
 0x18e   : > { %s505_s15 = spop %504 }
 0x18f   : > { %v359_v33 = vstv %s505_s15 }
 0x190   : > { %360 = vst [vmem:[%s221_s6] sm:$0xff] %v359_v33 }
 0x191   : > { %661 = shalt.err (!%p658_p13)
}
 0x192   : > { %510 = dma.vmem_to_hbm [thread:$0]  (%p789_p9), %s375_s7, 128, %s377_s8, %s362_s16  }
 0x193 PF: > { %s388_s19 = sand.u32 1, %s700_s9   ;;  %p520_p0 = pnand %p487_p12, %p796_p11 }
 0x194   : > { %s389_s25 = scalar_lea.sflag [#allocation6], %s388_s19 }
 0x195   : > { %p521_p1 = pneg %p520_p0 }
 0x197   : > { %695 = dma.done.wait (%p521_p1), %s389_s25, 128  }
 0x198   : > { %697 = vsyncadd (%p521_p1), %s389_s25, 4294967168  ;;  %s21_s14 = sadd.s32 1, %s720_s14   ;;  %s883_s9 = smov %s704_s10 }
 0x199   : > { %p18_p2 = scmp.ge.s32.totalorder %s21_s14, 4   ;;  %s884_s10 = smov %s708_s11 }
 0x19a   : > { %s885_s11 = smov %s794_s23  ;;  %s886_s12 = smov %s716_s13 }
 0x19b   : > { %s887_s13 = smov %s889_s17  ;;  %20 = sbr.rel (!%p18_p2) target bundleno = 8 (0x8), region = 94 }
 0x1a0   :  { %395 = vsyncpa [#allocation5], 1 }
 0x1a1   :  { %397 = vsyncpa [#allocation5 + $0x1], 1 }
 0x1a2   :  { %398 = vsyncpa [#allocation8], 1 }
 0x1a3   :  { %400 = vsyncpa [#allocation8 + $0x1], 1 }
 0x1a4   :  { %401 = vsyncpa [#allocation6], 1 }
 0x1a5   :  { %403 = vsyncpa [#allocation6 + $0x1], 1 }

</bundles_post_ra>
